<compile_context>
chip_gen: v6e
topology: v6e:2x2x1
jax: 0.10.0
libtpu: 0.0.40
codegen_flags: <defaults>
</compile_context>

<pallas_src>
import jax
import jax.numpy as jnp
from jax.experimental import pallas as pl
from jax.experimental.pallas import tpu as pltpu


def _round_up(x, m):
    return ((x + m - 1) // m) * m


def _vmem_capacity_bytes():
    """Physical per-core VMEM; conservative fallback = 64 MiB (v7x)."""
    try:
        info = pltpu.get_tpu_info()
        cap = getattr(info, "vmem_capacity_bytes", None)
        if cap:
            return int(cap)
    except Exception:
        pass
    return 64 * 1024 * 1024


def _patch_embed_kernel(x_ref, w_ref, b_ref, o_ref):
    # x_ref: (tm, K)  flattened patch vectors.
    #   NOTE: on the ragged edge tile, rows >= M hold unspecified (stale VMEM)
    #   data.  This is safe only because every row is independent and the
    #   output writeback is masked by Pallas -- do NOT add cross-row
    #   reductions or reuse of the padded rows here.
    # w_ref: (K, E)   projection weight (grid-invariant, resident in VMEM)
    # b_ref: (1, E)   bias (f32, grid-invariant)
    # o_ref: (tm, E)
    acc = jnp.dot(x_ref[...], w_ref[...], preferred_element_type=jnp.float32)
    acc = acc + b_ref[...]                       # VPU filler under DMA shadow
    o_ref[...] = acc.astype(o_ref.dtype)


def _choose_tile_m(M, K, E, in_itemsize, out_itemsize, vmem_budget_bytes):
    """Largest M-tile (multiple of 8, <= 2048) fitting the VMEM budget,
    capped so that grid_m >= 4 (megacore sharding + pipeline overlap)."""
    # Grid-invariant weight/bias still get double-buffered VMEM reservations.
    fixed = 2 * (K * E * in_itemsize + E * 4)
    budget = max(vmem_budget_bytes - fixed, 1 << 20)
    # Per output row: double-buffered x row + out row, plus the transient
    # (tm, E) f32 accumulator produced by the matmul / epilogue.
    per_row = 2 * (K * in_itemsize + E * out_itemsize) + E * 4
    tm = min(2048, budget // per_row)
    tm = min(tm, _round_up(pl.cdiv(M, 4), 8), _round_up(M, 8))
    tm = max(8, (tm // 8) * 8)
    return int(tm)


def hunyuan_video_patch_embed(hidden_states, weight, bias, patch_size,
                              compute_dtype=None):
    """
    hidden_states: (B, C, T, H, W)            (PyTorch NCDHW layout)
    weight:        (E, C, pt, ph, pw)         (PyTorch Conv3d weight layout)
    bias:          (E,)
    compute_dtype: optional (e.g. jnp.bfloat16) -- cast activations/weights
                   and write the output in this dtype (f32 accumulation).
    returns:       (B, num_patches, E), num_patches = (T//pt)*(H//ph)*(W//pw)
    """
    if isinstance(patch_size, int):
        patch_size = (patch_size, patch_size, patch_size)
    pt, ph, pw = patch_size

    B, C, T, H, W = hidden_states.shape
    E = weight.shape[0]
    Tn, Hn, Wn = T // pt, H // ph, W // pw
    N = Tn * Hn * Wn
    K = C * pt * ph * pw

    if compute_dtype is not None:
        # Cast BEFORE the relayout glue so the transpose traffic is also
        # halved when running bf16.
        hidden_states = hidden_states.astype(compute_dtype)
    out_dtype = hidden_states.dtype

    # Conv with stride == kernel drops trailing remainder elements.
    if (T, H, W) != (Tn * pt, Hn * ph, Wn * pw):
        hidden_states = hidden_states[:, :, :Tn * pt, :Hn * ph, :Wn * pw]

    # --- glue: extract non-overlapping patches, flattened in (pt, ph, pw, C)
    # order (weight is permuted once below to match), which keeps a longer
    # contiguous last dim for the relayout than the (C, pt, ph, pw) order.
    # TODO(synk): folding this relayout into the kernel needs an in-kernel
    # (C,pt,Hn,ph,Wn,pw) -> (Hn*Wn, K) reshuffle that Mosaic does not lower
    # reliably for tiny trailing dims, so it stays as XLA glue.
    x = hidden_states.reshape(B, C, Tn, pt, Hn, ph, Wn, pw)
    x = x.transpose(0, 2, 4, 6, 3, 5, 7, 1)     # (B, Tn, Hn, Wn, pt, ph, pw, C)
    x = x.reshape(B * N, K)

    # Weight permuted to match the (pt, ph, pw, C) column order, folded to
    # (K, E), cast to the activation dtype (bf16 path -> native bf16 MXU).
    # Bias kept f32 (added to the f32 accumulator inside the kernel).
    w_flat = weight.transpose(0, 2, 3, 4, 1).reshape(E, K).T.astype(x.dtype)
    b_row = bias.reshape(1, E).astype(jnp.float32)

    M = B * N
    in_isz = jnp.dtype(x.dtype).itemsize
    out_isz = jnp.dtype(out_dtype).itemsize

    # Generation-aware VMEM budget.
    vmem_cap = _vmem_capacity_bytes()
    if vmem_cap >= 128 * 2**20:          # v5e / v6e: 128 MiB physical
        budget, limit_cap = 96 * 2**20, 100 * 2**20
    else:                                # v7x: 64 MiB physical per TensorCore
        budget, limit_cap = 44 * 2**20, 48 * 2**20

    tm = _choose_tile_m(M, K, E, in_isz, out_isz, budget)
    grid_m = pl.cdiv(M, tm)              # ragged M -> masked edge tile

    vmem_needed = (2 * tm * K * in_isz          # double-buffered x tiles
                   + 2 * tm * E * out_isz       # double-buffered out tiles
                   + tm * E * 4                 # transient f32 accumulator
                   + 2 * K * E * in_isz         # resident weight (dbl-buffered)
                   + 2 * E * 4)                 # resident bias
    vmem_limit = int(min(limit_cap, max(32 * 2**20, vmem_needed + (4 << 20))))

    cost = pl.CostEstimate(
        flops=2 * M * K * E,
        transcendentals=0,
        bytes_accessed=M * K * in_isz + K * E * in_isz + M * E * out_isz + 4 * E,
    )

    out = pl.pallas_call(
        _patch_embed_kernel,
        out_shape=jax.ShapeDtypeStruct((M, E), out_dtype),
        grid_spec=pltpu.PrefetchScalarGridSpec(
            num_scalar_prefetch=0,
            grid=(grid_m,),
            in_specs=[
                pl.BlockSpec((tm, K), lambda i: (i, 0)),   # patch rows (pipelined)
                pl.BlockSpec((K, E), lambda i: (0, 0)),    # weight (grid-invariant)
                pl.BlockSpec((1, E), lambda i: (0, 0)),    # bias   (grid-invariant)
            ],
            out_specs=pl.BlockSpec((tm, E), lambda i: (i, 0)),
        ),
        compiler_params=pltpu.CompilerParams(
            dimension_semantics=("parallel",),
            vmem_limit_bytes=vmem_limit,
        ),
        cost_estimate=cost,
    )(x, w_flat, b_row)

    return out.reshape(B, N, E)


def _reference(hidden_states, weight, bias, patch_size):
    E = weight.shape[0]
    B = hidden_states.shape[0]
    ref = jax.lax.conv_general_dilated(
        hidden_states, weight, window_strides=patch_size, padding="VALID",
        dimension_numbers=("NCDHW", "OIDHW", "NCDHW"),
    ) + bias.reshape(1, E, 1, 1, 1)
    return ref.reshape(B, E, -1).transpose(0, 2, 1)


if __name__ == "__main__":
    key = jax.random.PRNGKey(0)
    k1, k2, k3, k4 = jax.random.split(key, 4)

    # Toy config consistent with the module: patch_size=2, in_chans=4,
    # embed_dim=32, input (B=2, C=4, T=8, H=8, W=8) -> 64 patches / sample.
    patch_size = (2, 2, 2)
    in_chans, embed_dim = 4, 32
    B, T, H, W = 2, 8, 8, 8

    x = jax.random.normal(k1, (B, in_chans, T, H, W), dtype=jnp.float32)
    weight = jax.random.normal(
        k2, (embed_dim, in_chans, *patch_size), dtype=jnp.float32) * 0.02
    bias = jax.random.normal(k3, (embed_dim,), dtype=jnp.float32) * 0.02

    # f32 path (tight tolerance vs. XLA conv reference).
    out = jax.block_until_ready(
        hunyuan_video_patch_embed(x, weight, bias, patch_size))
    ref = _reference(x, weight, bias, patch_size)
    assert out.shape == (B, (T // 2) * (H // 2) * (W // 2), embed_dim)
    assert jnp.allclose(out, ref, atol=1e-4, rtol=1e-4)

    # Ragged-M path: M = 640 patch rows -> cdiv grid with a masked edge tile.
    x2 = jax.random.normal(k4, (B, in_chans, 8, 16, 20), dtype=jnp.float32)
    out2 = jax.block_until_ready(
        hunyuan_video_patch_embed(x2, weight, bias, patch_size))
    ref2 = _reference(x2, weight, bias, patch_size)
    assert out2.shape == (B, 4 * 8 * 10, embed_dim)
    assert jnp.allclose(out2, ref2, atol=1e-4, rtol=1e-4)

    # Deployment (bf16) path: halves the dominant M x E HBM writeback;
    # accumulation stays f32, so only the input/weight cast introduces error.
    out_bf16 = jax.block_until_ready(
        hunyuan_video_patch_embed(x, weight, bias, patch_size,
                                  compute_dtype=jnp.bfloat16))
    assert out_bf16.dtype == jnp.bfloat16
    assert out_bf16.shape == out.shape
    assert jnp.allclose(out_bf16.astype(jnp.float32), ref, atol=5e-2, rtol=5e-2)

    print("KERNEL_OK")
</pallas_src>

<mosaic_0001>
module attributes {stable_mosaic.version = 11 : i64} {
  func.func @_patch_embed_kernel(%arg0: i32, %arg1: memref<32x32xf32, #tpu.memory_space<vmem>>, %arg2: memref<32x32xf32, #tpu.memory_space<vmem>>, %arg3: memref<1x32xf32, #tpu.memory_space<vmem>>, %arg4: memref<32x32xf32, #tpu.memory_space<vmem>>) attributes {dimension_semantics = [#tpu.dimension_semantics<parallel>], iteration_bounds = array<i64: 4>, scalar_prefetch = 0 : i64, scratch_operands = 0 : i64, tpu.core_type = #tpu.core_type<tc>, window_params = [{transform_indices = @transform_0, window_bounds = array<i64: 32, 32>}, {pipeline_mode = #tpu.pipeline_mode<synchronous>, transform_indices = @transform_1, window_bounds = array<i64: 32, 32>}, {pipeline_mode = #tpu.pipeline_mode<synchronous>, transform_indices = @transform_2, window_bounds = array<i64: 1, 32>}, {transform_indices = @transform_3, window_bounds = array<i64: 32, 32>}]} {
    %c0 = arith.constant 0 : index
    %c0_0 = arith.constant 0 : index
    %0 = vector.load %arg1[%c0, %c0_0] : memref<32x32xf32, #tpu.memory_space<vmem>>, vector<32x32xf32>
    %c0_1 = arith.constant 0 : index
    %c0_2 = arith.constant 0 : index
    %1 = vector.load %arg2[%c0_1, %c0_2] : memref<32x32xf32, #tpu.memory_space<vmem>>, vector<32x32xf32>
    %cst = arith.constant dense<0.000000e+00> : vector<32x32xf32>
    %2 = tpu.matmul %0, %1, %cst {dimension_numbers = #tpu.dot_dimension_numbers<[1], [0], [0], [1], [0, 0, 1, 1], [], []>} : vector<32x32xf32>, vector<32x32xf32>, vector<32x32xf32> -> vector<32x32xf32>
    %c0_3 = arith.constant 0 : index
    %c0_4 = arith.constant 0 : index
    %3 = vector.load %arg3[%c0_3, %c0_4] : memref<1x32xf32, #tpu.memory_space<vmem>>, vector<1x32xf32>
    %4 = vector.broadcast %3 : vector<1x32xf32> to vector<32x32xf32>
    %5 = arith.addf %2, %4 : vector<32x32xf32>
    %c0_5 = arith.constant 0 : index
    %c0_6 = arith.constant 0 : index
    %6 = vector.load %arg4[%c0_5, %c0_6] : memref<32x32xf32, #tpu.memory_space<vmem>>, vector<32x32xf32>
    tpu.vector_store %arg4[%c0_5, %c0_6], %5 {strides = array<i32>} : memref<32x32xf32, #tpu.memory_space<vmem>>, vector<32x32xf32>,
    return
  }
  func.func @transform_0(%arg0: i32) -> (i32, i32) {
    %c0_i32 = arith.constant 0 : i32
    %c0_i32_0 = arith.constant 0 : i32
    return %arg0, %c0_i32 : i32, i32
  }
  func.func @transform_1(%arg0: i32) -> (i32, i32) {
    %c0_i32 = arith.constant 0 : i32
    %c0_i32_0 = arith.constant 0 : i32
    %c0_i32_1 = arith.constant 0 : i32
    return %c0_i32, %c0_i32_0 : i32, i32
  }
  func.func @transform_2(%arg0: i32) -> (i32, i32) {
    %c0_i32 = arith.constant 0 : i32
    %c0_i32_0 = arith.constant 0 : i32
    %c0_i32_1 = arith.constant 0 : i32
    return %c0_i32, %c0_i32_0 : i32, i32
  }
  func.func @transform_3(%arg0: i32) -> (i32, i32) {
    %c0_i32 = arith.constant 0 : i32
    %c0_i32_0 = arith.constant 0 : i32
    return %arg0, %c0_i32 : i32, i32
  }
}

</mosaic_0001>

<bundles_post_ra>
// kernel: tpu_custom_call.1
= control target key start
LH: loop header
LB: loop body
LE: loop exit
PB: predicated region body
PF: predicated region fallthrough
CT: control target
= control target key end

     0   :  { %s429_s12 = smov 0   ;;  %s469_s0 = inlined_call_operand.vmem [shape: f32[128,32], index: 0, kind: input, shape index: {}]   ;;  %s470_s1 = inlined_call_operand.vmem [shape: f32[32,32], index: 1, kind: input, shape index: {}]   ;;  %s471_s2 = inlined_call_operand.vmem [shape: f32[1,32], index: 2, kind: input, shape index: {}]   ;;  %s472_s3 = inlined_call_operand.vmem [shape: f32[128,32], index: 3, kind: output, shape index: {}]  }
   0x1 LB: > { %s347_s13 = sadd.s32 4294967295, %s407_s12   ;;  %p351_p0 = scmp.ge.s32.totalorder %s407_s12, 1  ;;  %s407_s12 = sphi %s429_s12, %s13_s12  }
   0x2   : > { %p138_p1 = scmp.lt.s32.totalorder %s407_s12, 5 }
   0x4   : > { %p139_p2 = pnand %p351_p0, %p138_p1 }
   0x5   : > { %s352_s18 = sshll.u32 (!%p139_p2), %s347_s13, 2 }
   0x6   : > { %142 = sbr.rel (%p139_p2) target bundleno = 219 (0xdb), region = 32  ;;  %p163_p3 = scmp.lt.s32.totalorder (!%p139_p2), %s352_s18, 15 }
   0xb   : > { %v181_v0 = vld [vmem:[%s470_s1 + $0x18] sm:$0xff]  ;;  %v180_v1 = vld [vmem:[%s470_s1 + $0x10] sm:$0xff]  ;;  %v179_v2 = vld [vmem:[%s470_s1 + $0x8] sm:$0xff]  ;;  %s474_s18 = smov (!%p163_p3, %s352_s18), 15  ;;  %vm189_vm0 = vcmask 261120  }
   0xc   : > { %371 = vmatprep.subr.mxu0 %v181_v0  ;;  %385 = vmatprep.subr.mxu1 %v181_v0  ;;  %v178_v3 = vld [vmem:[%s470_s1] sm:$0xff]  ;;  %s353_s23 = sshll.u32 %s474_s18, 3 }
   0xd   : > { %372 = vmatpush3.msra.mxu0 %v181_v0  ;;  %389 = vmatpush3.msra.mxu1 %v181_v0  ;;  %s166_s26 = scalar_lea.vmem %s469_s0, %s353_s23  ;;  %v356_v8 = vld [vmem:[%s471_s2] ss:$0 sm:$0xff]  ;;  %s172_s4 = scalar_lea.vmem %s472_s3, %s353_s23 }
   0xe   : > { %373 = vmatprep.subr.mxu0 %v180_v1  ;;  %386 = vmatprep.subr.mxu1 %v180_v1  ;;  %v174_v4 = vld [vmem:[%s166_s26] sm:$0xff]  ;;  %v176_v5 = vld [vmem:[%s166_s26 + $0x10] sm:$0xff]  ;;  %v175_v6 = vld [vmem:[%s166_s26 + $0x8] sm:$0xff] }
   0xf   : > { %374 = vmatpush3.msra.mxu0 %v180_v1  ;;  %390 = vmatpush3.msra.mxu1 %v180_v1  ;;  %v177_v7 = vld [vmem:[%s166_s26 + $0x18] sm:$0xff] }
  0x10   : > { %375 = vmatprep.subr.mxu0 %v179_v2  ;;  %387 = vmatprep.subr.mxu1 %v179_v2 }
  0x11   : > { %376 = vmatpush3.msra.mxu0 %v179_v2  ;;  %391 = vmatpush3.msra.mxu1 %v179_v2 }
  0x12   : > { %377 = vmatprep.subr.mxu0 %v178_v3  ;;  %388 = vmatprep.subr.mxu1 %v178_v3 }
  0x13   : > { %378 = vmatpush3.msra.mxu0 %v178_v3  ;;  %392 = vmatpush3.msra.mxu1 %v178_v3 }
  0x14   : > { %379 = vmatprep.mubr.msk.f32.mxu0 %vm189_vm0, %v174_v4  ;;  %382 = vmatprep.mubr.msk.f32.mxu1 %vm189_vm0, %v176_v5 }
  0x15   : > { %380 = vmatmul.mubr.msk.f32.vlgmr.msra.gmra.mxu0 %vm189_vm0, %v175_v6  ;;  %383 = vmatmul.mubr.msk.f32.vlgmr.msra.gmra.mxu1 %vm189_vm0, %v177_v7 }
  0xd5   : > { %v381_v9 = vpop.f32.mrf.mxu0  ;;  %v384_v10 = vpop.f32.mrf.mxu1 }
  0xd6   : > { %v274_v11 = vadd.f32 %v381_v9, %v356_v8  ;;  %v284_v12 = vadd.f32 %v384_v10, %v356_v8 }
  0xd7   : > { %v268_v13 = vpop.f32.mrf.mxu0  ;;  %v278_v14 = vpop.f32.mrf.mxu1 }
  0xd8   : > { %288 = vst.msk [vmem:[%s172_s4 + $0x8] sm:$0xff] %vm189_vm0, %v274_v11  ;;  %290 = vst.msk [vmem:[%s172_s4 + $0x18] sm:$0xff] %vm189_vm0, %v284_v12  ;;  %v269_v15 = vadd.f32 %v356_v8, %v268_v13  ;;  %v279_v16 = vadd.f32 %v356_v8, %v278_v14 }
  0xda   : > { %287 = vst.msk [vmem:[%s172_s4] sm:$0xff] %vm189_vm0, %v269_v15  ;;  %289 = vst.msk [vmem:[%s172_s4 + $0x10] sm:$0xff] %vm189_vm0, %v279_v16 }
  0xdb PF: > { %s13_s12 = sadd.s32 1, %s407_s12  }
  0xdc   : > { %p10_p4 = scmp.ge.s32.totalorder %s13_s12, 6  }
  0xde   :  { %12 = sbr.rel (!%p10_p4) target bundleno = 1 (0x1), region = 62 }

</bundles_post_ra>
